<compile_context>
chip_gen: v7x
topology: tpu7x:2x2x1
jax: 0.10.0
libtpu: 0.0.40
codegen_flags: <defaults>
</compile_context>

<pallas_src>
import math
import functools

import jax
import jax.numpy as jnp
from jax import lax
from jax.experimental import pallas as pl
from jax.experimental.pallas import tpu as pltpu


_LANE_TILE_CAP = 2048            # lanes per tile (multiple of 128)
_POOL_TARGET_BYTES = 2 << 20     # ~2 MiB x-block per step in the pooling kernel
_APPLY_TARGET_BYTES = 2 << 20    # ~2 MiB x-block per step in the multiply kernel
_VMEM_LIMIT_BYTES = 32 * 1024 * 1024


def _cdiv(a, b):
    return -(-a // b)


def _pick_lane_tile(hw, n_rows, elem_bytes, target_bytes):
    """Largest lane tile (full extent, or a multiple of 128) within the per-step budget."""
    if n_rows * hw * elem_bytes <= target_bytes:
        return hw
    t = (target_bytes // (n_rows * elem_bytes)) // 128 * 128
    t = max(128, min(t, _LANE_TILE_CAP))
    return hw if t >= hw else t


def _eca_gate_kernel(w_ref, x_ref, gate_ref, acc_ref, pad_ref, *,
                     kernel_size, hw_total, lane_tile, ragged, pad_lo):
    """Grid (B, hw_tiles): accumulate spatial sum, then conv1d(C) + sigmoid.

    w_ref    : (k,) f32 in SMEM             shared Conv1d weight (no bias)
    x_ref    : (C, lane_tile) x.dtype       one spatial tile of one batch element
    gate_ref : (C, 1) x.dtype               per-channel gate (output, resident over hw)
    acc_ref  : (C, 1) f32 VMEM scratch      running spatial sum
    pad_ref  : (pad_lo + C + pad, 1) f32    zero-padded mean for shifted-add conv
    """
    t = pl.program_id(1)
    nt = pl.num_programs(1)
    pad = (kernel_size - 1) // 2

    @pl.when(t == 0)
    def _init():
        acc_ref[...] = jnp.zeros_like(acc_ref)

    # Accumulate the pooled sum in f32 (x itself stays in its native dtype).
    x = x_ref[...]
    if ragged:
        # Last spatial tile may hang past HW: zero out the garbage lanes.
        col = lax.broadcasted_iota(jnp.int32, x.shape, 1)
        valid = col < (hw_total - t * lane_tile)
        xf = jnp.where(valid, x.astype(jnp.float32), 0.0)
    else:
        xf = x.astype(jnp.float32)
    acc_ref[...] += jnp.sum(xf, axis=-1, keepdims=True)

    @pl.when(t == nt - 1)
    def _finalize():
        C = acc_ref.shape[0]
        # Zero-padded per-channel mean along the sublane axis.  The mean is
        # written at a sublane-aligned offset (pad_lo is a multiple of 8).
        pad_ref[...] = jnp.zeros_like(pad_ref)
        pad_ref[pl.ds(pad_lo, C), :] = acc_ref[...] * (1.0 / float(hw_total))
        # k-tap zero-padded conv along channels = k shifted-adds
        # (O(k*C) VPU work; no band matrix, no MXU).
        y = jnp.zeros((C, 1), jnp.float32)
        for j in range(kernel_size):
            y = y + w_ref[j] * pad_ref[pl.ds(pad_lo + j - pad, C), :]
        gate_ref[...] = jax.nn.sigmoid(y).astype(gate_ref.dtype)


def _eca_apply_kernel(gate_ref, x_ref, o_ref):
    """Grid (row_tiles, lane_tiles): out = x * gate, all in x's native dtype."""
    o_ref[...] = x_ref[...] * gate_ref[...]


def eca_block_pallas(x, w):
    """x: (B, C, H, W) NCHW.  w: (kernel_size,) Conv1d weight (no bias)."""
    B, C, H, W = x.shape
    k = int(w.shape[0])
    pad = (k - 1) // 2
    pad_lo = ((pad + 7) // 8) * 8 if pad > 0 else 0   # sublane-aligned left padding
    hw = H * W
    rows = B * C
    esize = jnp.dtype(x.dtype).itemsize
    w = w.astype(jnp.float32)

    # ---------- Kernel 1: global avg pool -> 1D conv over C -> sigmoid ----------
    t1 = _pick_lane_tile(hw, C, esize, _POOL_TARGET_BYTES)
    nt1 = _cdiv(hw, t1)
    ragged1 = (hw % t1) != 0

    gate = pl.pallas_call(
        functools.partial(_eca_gate_kernel, kernel_size=k, hw_total=hw,
                          lane_tile=t1, ragged=ragged1, pad_lo=pad_lo),
        out_shape=jax.ShapeDtypeStruct((B, C, 1), x.dtype),
        grid_spec=pltpu.PrefetchScalarGridSpec(
            num_scalar_prefetch=0,
            grid=(B, nt1),
            in_specs=[
                pl.BlockSpec(memory_space=pltpu.MemorySpace.SMEM),      # w
                pl.BlockSpec((None, C, t1), lambda b, t: (b, 0, t)),    # x tile
            ],
            out_specs=pl.BlockSpec((None, C, 1), lambda b, t: (b, 0, 0)),
            scratch_shapes=[
                pltpu.VMEM((C, 1), jnp.float32),                 # pooled-sum accumulator
                pltpu.VMEM((pad_lo + C + pad, 1), jnp.float32),  # zero-padded mean
            ],
        ),
        compiler_params=pltpu.CompilerParams(
            dimension_semantics=("parallel", "arbitrary"),
            vmem_limit_bytes=_VMEM_LIMIT_BYTES),
    )(w, x.reshape(B, C, hw))

    # ---------- Kernel 2: out = x * gate (streaming broadcast multiply) ----------
    t2 = hw if hw <= _LANE_TILE_CAP else _LANE_TILE_CAP
    row_bytes = t2 * esize
    if rows * row_bytes <= _APPLY_TARGET_BYTES or rows <= 8:
        rt = rows
    else:
        rt = min(rows, max(8, (_APPLY_TARGET_BYTES // row_bytes) // 8 * 8))
    nr = _cdiv(rows, rt)
    nt2 = _cdiv(hw, t2)

    out = pl.pallas_call(
        _eca_apply_kernel,
        out_shape=jax.ShapeDtypeStruct((rows, hw), x.dtype),
        grid_spec=pltpu.PrefetchScalarGridSpec(
            num_scalar_prefetch=0,
            grid=(nr, nt2),
            in_specs=[
                pl.BlockSpec((rt, 1), lambda r, t: (r, 0)),     # gate rows
                pl.BlockSpec((rt, t2), lambda r, t: (r, t)),    # x tile
            ],
            out_specs=pl.BlockSpec((rt, t2), lambda r, t: (r, t)),
        ),
        compiler_params=pltpu.CompilerParams(
            dimension_semantics=("parallel", "parallel"),
            vmem_limit_bytes=_VMEM_LIMIT_BYTES),
    )(gate.reshape(rows, 1), x.reshape(rows, hw))

    return out.reshape(B, C, H, W)


def _eca_reference(x, w):
    """Pure-JAX reference matching the PyTorch module semantics."""
    B, C, H, W = x.shape
    k = int(w.shape[0])
    pad = (k - 1) // 2
    pooled = jnp.mean(x, axis=(2, 3))                       # (B, C)
    yp = jnp.pad(pooled, ((0, 0), (pad, pad)))
    conv = jnp.stack(
        [jnp.sum(yp[:, c:c + k] * w, axis=-1) for c in range(C)], axis=-1)
    gate = jax.nn.sigmoid(conv)[:, :, None, None]
    return x * gate


if __name__ == "__main__":
    # Module config: channel=16, b=1, gamma=2 -> kernel_size=3, padding=1.
    B, C, H, W = 2, 16, 16, 16
    kernel_size = int(abs((math.log(C, 2) + 1) / 2))
    kernel_size = kernel_size if kernel_size % 2 else kernel_size + 1

    key = jax.random.PRNGKey(0)
    kx, kw = jax.random.split(key)
    x = jax.random.normal(kx, (B, C, H, W), dtype=jnp.float32)
    # Deterministic synthetic Conv1d weight (kaiming-uniform-like bound).
    bound = 1.0 / math.sqrt(kernel_size)
    w = jax.random.uniform(kw, (kernel_size,), minval=-bound, maxval=bound,
                           dtype=jnp.float32)

    out = eca_block_pallas(x, w)
    jax.block_until_ready(out)

    ref = _eca_reference(x, w)
    assert out.shape == x.shape and out.dtype == x.dtype
    assert jnp.allclose(out, ref, atol=1e-5, rtol=1e-5), "mismatch vs reference"
    print("KERNEL_OK")
</pallas_src>

<mosaic_0001>
module attributes {stable_mosaic.version = 11 : i64} {
  func.func @_eca_gate_kernel(%arg0: i32, %arg1: i32, %arg2: memref<3xf32, #tpu.memory_space<smem>>, %arg3: memref<1x16x256xf32, #tpu.memory_space<vmem>>, %arg4: memref<1x16x1xf32, #tpu.memory_space<vmem>>, %arg5: memref<16x1xf32, #tpu.memory_space<vmem>>, %arg6: memref<25x1xf32, #tpu.memory_space<vmem>>) attributes {dimension_semantics = [#tpu.dimension_semantics<parallel>, #tpu.dimension_semantics<arbitrary>], iteration_bounds = array<i64: 2, 1>, scalar_prefetch = 0 : i64, scratch_operands = 2 : i64, tpu.core_type = #tpu.core_type<tc>, window_params = [{transform_indices = @transform_0, window_bounds = array<i64: 3>}, {transform_indices = @transform_1, window_bounds = array<i64: 1, 16, 256>}, {transform_indices = @transform_2, window_bounds = array<i64: 1, 16, 1>}]} {
    %c0_i32 = arith.constant 0 : i32
    %0 = arith.cmpi eq, %arg1, %c0_i32 : i32
    %1 = arith.extui %0 : i1 to i32
    %c0_i32_0 = arith.constant 0 : i32
    %2 = arith.cmpi ne, %1, %c0_i32_0 : i32
    scf.if %2 {
      %cst_9 = arith.constant 0.000000e+00 : f32
      %13 = vector.broadcast %cst_9 : f32 to vector<16x1xf32>
      %c0_10 = arith.constant 0 : index
      %c0_11 = arith.constant 0 : index
      %14 = vector.load %arg5[%c0_10, %c0_11] : memref<16x1xf32, #tpu.memory_space<vmem>>, vector<16x1xf32>
      tpu.vector_store %arg5[%c0_10, %c0_11], %13 {strides = array<i32>} : memref<16x1xf32, #tpu.memory_space<vmem>>, vector<16x1xf32>,
    } else {
    }
    %c0 = arith.constant 0 : index
    %c0_1 = arith.constant 0 : index
    %c0_2 = arith.constant 0 : index
    %3 = vector.load %arg3[%c0, %c0_1, %c0_2] : memref<1x16x256xf32, #tpu.memory_space<vmem>>, vector<1x16x256xf32>
    %4 = vector.shape_cast %3 : vector<1x16x256xf32> to vector<16x256xf32>
    %c0_3 = arith.constant 0 : index
    %c0_4 = arith.constant 0 : index
    %5 = vector.load %arg5[%c0_3, %c0_4] : memref<16x1xf32, #tpu.memory_space<vmem>>, vector<16x1xf32>
    %cst = arith.constant dense<0.000000e+00> : vector<16xf32>
    %6 = vector.multi_reduction <add>, %4, %cst [1] : vector<16x256xf32> to vector<16xf32>
    %7 = vector.shape_cast %6 : vector<16xf32> to vector<16x1xf32>
    %8 = arith.addf %5, %7 : vector<16x1xf32>
    %c0_5 = arith.constant 0 : index
    %c0_6 = arith.constant 0 : index
    %9 = vector.load %arg5[%c0_5, %c0_6] : memref<16x1xf32, #tpu.memory_space<vmem>>, vector<16x1xf32>
    tpu.vector_store %arg5[%c0_5, %c0_6], %8 {strides = array<i32>} : memref<16x1xf32, #tpu.memory_space<vmem>>, vector<16x1xf32>,
    %c0_i32_7 = arith.constant 0 : i32
    %10 = arith.cmpi eq, %arg1, %c0_i32_7 : i32
    %11 = arith.extui %10 : i1 to i32
    %c0_i32_8 = arith.constant 0 : i32
    %12 = arith.cmpi ne, %11, %c0_i32_8 : i32
    scf.if %12 {
      %cst_9 = arith.constant 0.000000e+00 : f32
      %13 = vector.broadcast %cst_9 : f32 to vector<25x1xf32>
      %c0_10 = arith.constant 0 : index
      %c0_11 = arith.constant 0 : index
      %14 = vector.load %arg6[%c0_10, %c0_11] : memref<25x1xf32, #tpu.memory_space<vmem>>, vector<25x1xf32>
      tpu.vector_store %arg6[%c0_10, %c0_11], %13 {strides = array<i32>} : memref<25x1xf32, #tpu.memory_space<vmem>>, vector<25x1xf32>,
      %c0_12 = arith.constant 0 : index
      %c0_13 = arith.constant 0 : index
      %15 = vector.load %arg5[%c0_12, %c0_13] : memref<16x1xf32, #tpu.memory_space<vmem>>, vector<16x1xf32>
      %cst_14 = arith.constant 3.906250e-03 : f32
      %16 = vector.broadcast %cst_14 : f32 to vector<16x1xf32>
      %17 = arith.mulf %15, %16 : vector<16x1xf32>
      %c8 = arith.constant 8 : index
      %c0_15 = arith.constant 0 : index
      %18 = vector.load %arg6[%c8, %c0_15] : memref<25x1xf32, #tpu.memory_space<vmem>>, vector<16x1xf32>
      tpu.vector_store %arg6[%c8, %c0_15], %17 {strides = array<i32>} : memref<25x1xf32, #tpu.memory_space<vmem>>, vector<16x1xf32>,
      %cst_16 = arith.constant 0.000000e+00 : f32
      %19 = vector.broadcast %cst_16 : f32 to vector<16x1xf32>
      %c0_17 = arith.constant 0 : index
      %20 = memref.load %arg2[%c0_17] : memref<3xf32, #tpu.memory_space<smem>>
      %c7 = arith.constant 7 : index
      %c0_18 = arith.constant 0 : index
      %21 = vector.load %arg6[%c7, %c0_18] : memref<25x1xf32, #tpu.memory_space<vmem>>, vector<16x1xf32>
      %22 = vector.broadcast %20 : f32 to vector<16x1xf32>
      %23 = arith.mulf %22, %21 : vector<16x1xf32>
      %24 = arith.addf %19, %23 : vector<16x1xf32>
      %c1 = arith.constant 1 : index
      %25 = memref.load %arg2[%c1] : memref<3xf32, #tpu.memory_space<smem>>
      %c8_19 = arith.constant 8 : index
      %c0_20 = arith.constant 0 : index
      %26 = vector.load %arg6[%c8_19, %c0_20] : memref<25x1xf32, #tpu.memory_space<vmem>>, vector<16x1xf32>
      %27 = vector.broadcast %25 : f32 to vector<16x1xf32>
      %28 = arith.mulf %27, %26 : vector<16x1xf32>
      %29 = arith.addf %24, %28 : vector<16x1xf32>
      %c2 = arith.constant 2 : index
      %30 = memref.load %arg2[%c2] : memref<3xf32, #tpu.memory_space<smem>>
      %c9 = arith.constant 9 : index
      %c0_21 = arith.constant 0 : index
      %31 = vector.load %arg6[%c9, %c0_21] : memref<25x1xf32, #tpu.memory_space<vmem>>, vector<16x1xf32>
      %32 = vector.broadcast %30 : f32 to vector<16x1xf32>
      %33 = arith.mulf %32, %31 : vector<16x1xf32>
      %34 = arith.addf %29, %33 : vector<16x1xf32>
      %35 = arith.negf %34 : vector<16x1xf32>
      %36 = math.exp %35 : vector<16x1xf32>
      %cst_22 = arith.constant 1.000000e+00 : f32
      %37 = vector.broadcast %cst_22 : f32 to vector<16x1xf32>
      %38 = arith.addf %37, %36 : vector<16x1xf32>
      %39 = arith.divf %37, %38 : vector<16x1xf32>
      %c0_23 = arith.constant 0 : index
      %c0_24 = arith.constant 0 : index
      %c0_25 = arith.constant 0 : index
      %40 = vector.load %arg4[%c0_23, %c0_24, %c0_25] : memref<1x16x1xf32, #tpu.memory_space<vmem>>, vector<1x16x1xf32>
      %41 = vector.shape_cast %40 : vector<1x16x1xf32> to vector<16x1xf32>
      %42 = vector.shape_cast %39 : vector<16x1xf32> to vector<1x16x1xf32>
      tpu.vector_store %arg4[%c0_23, %c0_24, %c0_25], %42 {strides = array<i32>} : memref<1x16x1xf32, #tpu.memory_space<vmem>>, vector<1x16x1xf32>,
    } else {
    }
    return
  }
  func.func @transform_0(%arg0: i32, %arg1: i32) -> i32 {
    %c0_i32 = arith.constant 0 : i32
    %c0_i32_0 = arith.constant 0 : i32
    return %c0_i32 : i32
  }
  func.func @transform_1(%arg0: i32, %arg1: i32) -> (i32, i32, i32) {
    %c0_i32 = arith.constant 0 : i32
    %c0_i32_0 = arith.constant 0 : i32
    return %arg0, %c0_i32, %arg1 : i32, i32, i32
  }
  func.func @transform_2(%arg0: i32, %arg1: i32) -> (i32, i32, i32) {
    %c0_i32 = arith.constant 0 : i32
    %c0_i32_0 = arith.constant 0 : i32
    %c0_i32_1 = arith.constant 0 : i32
    return %arg0, %c0_i32, %c0_i32_0 : i32, i32, i32
  }
}

</mosaic_0001>

<bundles_post_ra>
// kernel: tpu_custom_call.1
= control target key start
LH: loop header
LB: loop body
LE: loop exit
PB: predicated region body
PF: predicated region fallthrough
CT: control target
= control target key end

     0   :  { %7 = vsyncpa [#allocation6], 0  ;;  %s739_s0 = inlined_call_operand.hbm [shape: f32[3], index: 0, kind: input, shape index: {}]   ;;  %s740_s1 = inlined_call_operand.hbm [shape: f32[2,16,256], index: 1, kind: input, shape index: {}]   ;;  %s741_s2 = inlined_call_operand.vmem [shape: f32[2,16,1], index: 2, kind: output, shape index: {}]  }
   0x1   :  { %8 = vsyncpa [#allocation5], 0 }
   0x2   :  { %10 = vsyncpa [#allocation5 + $0x1], 0  ;;  %s576_s9 = smov 0   ;;  %s578_s10 = smov 0  }
   0x3   :  { %s580_s11 = smov 0   ;;  %s582_s12 = smov 0  }
   0x4   :  { %s584_s13 = smov 0   ;;  %s586_s14 = smov 0  }
   0x5 LB: > { %s359_s15 = sadd.s32 4294967295, %s554_s14   ;;  %s58_s16 = sadd.s32 1, %s542_s11  ;;  %s554_s14 = sphi %s586_s14, %s16_s14   ;;  %s550_s13 = sphi %s584_s13, %s755_s13   ;;  %s546_s12 = sphi %s582_s12, %s754_s12   ;;  %s542_s11 = sphi %s580_s11, %s753_s11   ;;  %s538_s10 = sphi %s578_s10, %s752_s10   ;;  %s534_s9 = sphi %s576_s9, %s751_s9  }
   0x6   : > { %p65_p0 = scmp.ne.s32.totalorder %s542_s11, %s538_s10  ;;  %p66_p1 = scmp.eq.s32.totalorder %s554_s14, 0 }
   0x7   : > { %p71_p2 = scmp.ne.s32.totalorder %s538_s10, %s534_s9  ;;  %p610_p3 = scmp.eq.s32.totalorder %s359_s15, 0 }
   0x8   : > { %p67_p4 = por %p66_p1, %p65_p0  ;;  %p361_p5 = scmp.ge.s32.totalorder %s554_s14, 1 }
   0x9   : > { %s745_s17 = scalar_select %p610_p3, 1, 0 }
   0xa   : > { %p617_p6 = por %p610_p3, %p71_p2  ;;  %p108_p7 = scmp.lt.s32.totalorder %s554_s14, 3 }
   0xb   : > { %p395_p9 = scmp.lt.s32.totalorder %s554_s14, 2  ;;  %s28_s21 = sadd.s32 1, %s550_s13 }
   0xc   : > { %s746_s18 = scalar_select %p617_p6, 1, 0 }
   0xd   : > { %p622_p8 = pnand %p361_p5, %p108_p7  ;;  %p629_p11 = pnand %p395_p9, %p67_p4 }
   0xe   : > { %p30_p13 = scmp.ge.s32.totalorder %s28_s21, 2  ;;  %s130_s22 = sand.u32 1, %s542_s11  }
   0xf   : > { %p386_p10 = pneg %p622_p8  ;;  %s457_s25 = scalar_lea.hbm %s739_s0, 16 }
  0x10   : > { %p458_p0 = scmp.ne.s32.totalorder %s739_s0, %s457_s25  ;;  %p464_p4 = scmp.lt.u32.totalorder %s457_s25, %s739_s0 }
  0x11   : > { %p387_p12 = pnand %p386_p10, %p610_p3 }
  0x13   : > { %p459_p1 = pneg %p387_p12 }
  0x15   : > { %p460_p2 = pnand %p459_p1, %p458_p0 }
  0x17   : > { %p461_p5 = pneg %p460_p2 }
  0x19   : > { %p466_p7 = pnand %p464_p4, %p461_p5 }
  0x1b   : > { %469 = shalt.err (!%p466_p7)
}
  0x1c   : > { %s556_s30 = smov [#allocation4]   ;;  %s757_s21 = smov (%p30_p13, %s28_s21), 0 }
  0x1d   : > { %389 = dma.hbm_to_smem (!%p387_p12), %s739_s0, 16, %s556_s30, [#allocation6]  }
  0x1e   : > { %s364_s5 = sshll.u32 %s130_s22, 5  ;;  %s378_s6 = sshll.u32 %s550_s13, 9 }
  0x1f   : > { %s53_s7 = ssub.s32 %s550_s13, %s757_s21  ;;  %s657_s15 = scalar_lea.hbm %s740_s1, %s378_s6 }
  0x20   : > { %p56_p9 = scmp.eq.s32.totalorder %s53_s7, 0  ;;  %s134_s23 = scalar_lea.vmem [#allocation7], %s364_s5 }
  0x21   : > { %s143_s24 = sshll.u32 %s134_s23, 4  ;;  %s666_s26 = scalar_lea.sflag [#allocation5], %s130_s22  ;;  %s664_s24 = int_to_ptr.vmem [resolvable:$true] %s143_s24 }
  0x22   : > { %s662_s25 = scalar_select %p56_p9, %s542_s11, %s58_s16  }
  0x23   : > { %s470_s27 = scalar_lea.hbm %s657_s15, 512  ;;  %p472_p12 = pneg %p629_p11 }
  0x24   : > { %p471_p10 = scmp.ne.s32.totalorder %s657_s15, %s470_s27  ;;  %s475_s30 = scalar_lea.hbm %s740_s1, 1024 }
  0x25   : > { %p476_p1 = scmp.lt.u32.totalorder %s657_s15, %s740_s1  ;;  %p477_p2 = scmp.lt.u32.totalorder %s475_s30, %s470_s27 }
  0x26   : > { %p473_p13 = pnand %p472_p12, %p471_p10  ;;  %p479_p4 = scmp.lt.u32.totalorder %s470_s27, %s657_s15 }
  0x27   : > { %p478_p5 = por %p477_p2, %p476_p1 }
  0x28   : > { %p474_p0 = pneg %p473_p13 }
  0x29   : > { %p480_p7 = por %p479_p4, %p478_p5 }
  0x2b   : > { %p481_p9 = pnand %p480_p7, %p474_p0 }
  0x2d   : > { %484 = shalt.err (!%p481_p9)
}
  0x2e   : > { %s485_s16 = scalar_lea.vmem %s664_s24, 512  ;;  %s557_s22 = smov [#allocation7]  }
  0x2f   : > { %p486_p10 = scmp.ne.s32.totalorder %s664_s24, %s485_s16  ;;  %s490_s5 = sshll.u32 %s557_s22, 4  ;;  %s491_s5 = int_to_ptr.vmem [resolvable:$false] %s490_s5 }
  0x30   : > { %s492_s6 = scalar_lea.vmem %s491_s5, 1024  ;;  %p493_p3 = scmp.lt.s32.totalorder %s664_s24, %s491_s5 }
  0x31   : > { %p488_p13 = pnand %p486_p10, %p472_p12  ;;  %p494_p1 = scmp.lt.s32.totalorder %s492_s6, %s485_s16 }
  0x33   : > { %p489_p6 = pneg %p488_p13  ;;  %p495_p2 = por %p494_p1, %p493_p3 }
  0x35   : > { %p496_p5 = pnand %p495_p2, %p489_p6 }
  0x37   : > { %499 = shalt.err (!%p496_p5)
}
  0x38   : > { %s558_s7 = smov 256   ;;  %s559_s8 = smov 16  }
  0x39   : > { %393 = dma.hbm_to_vmem [thread:$0]  (!%p629_p11), %s657_s15, 512, %s664_s24, %s666_s26, %s558_s7, %s558_s7, %s559_s8  }
  0x3a   : > { %155 = sbr.rel (%p622_p8) target bundleno = 275 (0x113), region = 28  ;;  %p749_p12 = scmp.ne.s32.totalorder (!%p622_p8), %s745_s17, 0 }
  0x41   : > { %525 = dma.done.wait (%p749_p12), [#allocation6], 16  }
  0x42   : > { %527 = vsyncadd (%p749_p12), [#allocation6], 4294967280  ;;  %s161_s9 = sand.u32 1, %s538_s10   ;;  %p750_p3 = scmp.ne.s32.totalorder %s746_s18, 0 }
  0x43   : > { %s369_s23 = sshll.u32 %s161_s9, 5  ;;  %s162_s27 = scalar_lea.sflag [#allocation5], %s161_s9 }
  0x44   : > { %s165_s28 = scalar_lea.vmem [#allocation7], %s369_s23 }
  0x45   : > { %529 = dma.done.wait (%p750_p3), %s162_s27, 512  }
  0x46   : > { %531 = vsyncadd (%p750_p3), %s162_s27, 4294966784 }
  0x47   : > { %170 = sfence }
  0x48   : > { %v200_v0 = vld [vmem:[%s165_s28] sm:$0xff]  ;;  %v201_v1 = vld [vmem:[%s165_s28 + $0x8] sm:$0xff]  ;;  %v202_v2 = vld [vmem:[%s165_s28 + $0x10] sm:$0xff]  ;;  %vm223_vm0 = vcmask 0   ;;  %vm197_vm1 = vcmask 7168   ;;  %v560_v6 = vmov 0.0  }
  0x49   : > { %v206_v3 = vadd.f32 %v201_v1, %v200_v0  ;;  %v203_v4 = vld [vmem:[%s165_s28 + $0x18] sm:$0xff]  ;;  %198 = vst.msk [vmem:[#allocation2] sm:$0xff] %vm197_vm1, %v560_v6  ;;  %220 = vst.msk [vmem:[#allocation3] sm:$0xff] %vm197_vm1, %v560_v6  ;;  %s231_s17 = sld [smem:[#allocation4]]  ;;  %s372_s18 = sld [smem:[#allocation4 + $0x1]] }
  0x4a   : > { %v209_v5 = vadd.f32 %v203_v4, %v202_v2  ;;  %221 = vst.msk [vmem:[#allocation3 + $0x8] sm:$0xff] %vm197_vm1, %v560_v6  ;;  %222 = vst.msk [vmem:[#allocation3 + $0x10] sm:$0xff] %vm197_vm1, %v560_v6  ;;  %s373_s19 = sld [smem:[#allocation4 + $0x2]]  ;;  %p188_p6 = scmp.lt.s32.totalorder %s546_s12, 1 }
  0x4b   : > { %207 = vadd.xlane.f32.xlu0 %v206_v3  ;;  %224 = vst.msk [vmem:[#allocation3 + $0x18] sm:$0x1] %vm223_vm0, %v560_v6 }
  0x4c   : > { %199 = vst.msk [vmem:[#allocation2 + $0x8] sm:$0xff] %vm197_vm1, %v560_v6  ;;  %s759_s12 = smov (!%p188_p6, %s546_s12), 1 }
  0x4d   : > { %s379_s20 = sshll.u32 %s759_s12, 4 }
  0x4e   : > { %s192_s26 = scalar_lea.vmem %s741_s2, %s379_s20 }
  0x4f   : > { %210 = vadd.xlane.f32.xlu0 %v209_v5  ;;  %v234_v17 = vstv %s231_s17  ;;  %v242_v18 = vstv %s372_s18 }
  0x50   : > { %v204_v7 = vld [vmem:[#allocation2] sm:$0xff]  ;;  %v250_v23 = vstv %s373_s19 }
  0x53   : > { %v205_v10 = vld [vmem:[#allocation2 + $0x8] sm:$0xff] }
  0xd8   : > { %v208_v8 = vpop.xlane.xlu0 %207 }
  0xd9   : > { %v212_v9 = vadd.f32 %v208_v8, %v204_v7 }
  0xdb   : > { %215 = vst.msk [vmem:[#allocation2] sm:$0xff] %vm197_vm1, %v212_v9 }
  0xdc   : > { %v211_v11 = vpop.xlane.xlu0 %210 }
  0xdd   : > { %v213_v12 = vadd.f32 %v211_v11, %v205_v10 }
  0xdf   : > { %216 = vst.msk [vmem:[#allocation2 + $0x8] sm:$0xff] %vm197_vm1, %v213_v12 }
  0xe2   : > { %v225_v13 = vld [vmem:[#allocation2] sm:$0xff] }
  0xe3   : > { %v227_v14 = vmul.f32 0.00390625, %v225_v13 }
  0xe5   : > { %229 = vst.msk [vmem:[#allocation3 + $0x8] sm:$0xff] %vm197_vm1, %v227_v14 }
  0xe6   : > { %v226_v15 = vld [vmem:[#allocation2 + $0x8] sm:$0xff] }
  0xe7   : > { %v228_v16 = vmul.f32 0.00390625, %v226_v15 }
  0xe9   : > { %230 = vst.msk [vmem:[#allocation3 + $0x10] sm:$0xff] %vm197_vm1, %v228_v16 }
  0xec   : > { %v232_v19 = vld [vmem:[#allocation3 + $0x7] sm:$0xff] }
  0xed   : > { %v240_v20 = vld [vmem:[#allocation3 + $0x8] sm:$0xff]  ;;  %v235_v21 = vmul.f32 %v234_v17, %v232_v19 }
  0xee   : > { %v243_v22 = vmul.f32 %v242_v18, %v240_v20 }
  0xf0   : > { %v233_v24 = vld [vmem:[#allocation3 + $0xf] sm:$0xff]  ;;  %v245_v27 = vadd.f32 %v243_v22, %v235_v21 }
  0xf1   : > { %v241_v25 = vld [vmem:[#allocation3 + $0x10] sm:$0xff]  ;;  %v236_v28 = vmul.f32 %v234_v17, %v233_v24 }
  0xf2   : > { %v248_v26 = vld [vmem:[#allocation3 + $0x9] sm:$0xff]  ;;  %v244_v29 = vmul.f32 %v242_v18, %v241_v25  ;;  %v249_v30 = vld [vmem:[#allocation3 + $0x11] sm:$0xff] }
  0xf3   : > { %v251_v31 = vmul.f32 %v250_v23, %v248_v26  ;;  %v252_v33 = vmul.f32 %v250_v23, %v249_v30 }
  0xf4   : > { %v246_v32 = vadd.f32 %v244_v29, %v236_v28 }
  0xf5   : > { %v253_v34 = vadd.f32 %v251_v31, %v245_v27 }
  0xf6   : > { %v254_v35 = vadd.f32 %v252_v33, %v246_v32 }
  0xf7   : > { %v374_v36 = vmul.f32 -1.442695, %v253_v34 }
  0xf8   : > { %v375_v37 = vmul.f32 -1.442695, %v254_v35 }
  0xf9   : > { %449 = vpow2.f32 %v374_v36 }
  0xfa   : > { %451 = vpow2.f32 %v375_v37 }
 0x103   : > { %v450_v38 = vpop.eup %449 }
 0x104   : > { %v261_v39 = vadd.f32 1.0, %v450_v38  ;;  %v452_v40 = vpop.eup %451 }
 0x105   : > { %v262_v41 = vadd.f32 1.0, %v452_v40 }
 0x106   : > { %453 = vrcp.f32 %v261_v39 }
 0x107   : > { %455 = vrcp.f32 %v262_v41 }
 0x110   : > { %v454_v42 = vpop.eup %453 }
 0x111   : > { %267 = vst.msk [vmem:[%s192_s26] sm:$0xff] %vm197_vm1, %v454_v42  ;;  %v456_v43 = vpop.eup %455 }
 0x112   : > { %268 = vst.msk [vmem:[%s192_s26 + $0x8] sm:$0xff] %vm197_vm1, %v456_v43 }
 0x113 PF: > { %s16_s14 = sadd.s32 1, %s554_s14   ;;  %s751_s9 = smov %s538_s10 }
 0x114   : > { %p13_p8 = scmp.ge.s32.totalorder %s16_s14, 4   ;;  %s752_s10 = smov %s542_s11 }
 0x115   : > { %s753_s11 = smov %s662_s25  ;;  %s754_s12 = smov %s550_s13 }
 0x116   : > { %s755_s13 = smov %s757_s21  ;;  %15 = sbr.rel (!%p13_p8) target bundleno = 5 (0x5), region = 81 }
 0x11d   :  { %290 = vsyncpa [#allocation5], 1 }
 0x11e   :  { %292 = vsyncpa [#allocation5 + $0x1], 1 }
 0x11f   :  { %293 = vsyncpa [#allocation6], 1 }
 0x120   :  { %295 = vsyncpa [#allocation6 + $0x1], 1 }

</bundles_post_ra>
